<compile_context>
chip_gen: v5e
topology: v5e:2x2
jax: 0.10.0
libtpu: 0.0.40
codegen_flags: <defaults>
</compile_context>

<pallas_src>
import jax
import jax.numpy as jnp
from jax.experimental import pallas as pl
from jax.experimental.pallas import tpu as pltpu

HIDDEN = 10       # logical hidden width (nn.Linear(input_dim, 10))
HIDDEN_PAD = 16   # padded hidden width (lane/sublane friendly, zero-padded)
OUT = 1


def _round_up(n, m):
    return ((n + m - 1) // m) * m


def mlp_kernel(x_ref, w1_ref, b1_ref, w2_ref, b2_ref, o_ref):
    # fc1 on the MXU: (tb, D) @ (D, H_PAD) -> (tb, H_PAD), f32 accumulate.
    h = jnp.dot(x_ref[...], w1_ref[...], preferred_element_type=jnp.float32)
    # Bias + ReLU in f32 (padded hidden columns stay exactly 0).
    h = jnp.maximum(h + b1_ref[...], 0.0)
    # fc2 on the VPU: broadcast-multiply by the (1, H_PAD) weight row and
    # reduce over the (small) hidden lane axis -> (tb, 1).
    z = jnp.sum(h * w2_ref[...], axis=-1, keepdims=True) + b2_ref[...]
    o_ref[...] = jax.nn.sigmoid(z).astype(o_ref.dtype)


def _choose_tile_b(B, D, itemsize):
    """Batch tile from a VMEM byte budget (v7x-aware), >=2 steps when possible."""
    try:
        vmem_bytes = pltpu.get_tpu_info().vmem_capacity_bytes
    except Exception:  # pragma: no cover - fallback if info is unavailable
        vmem_bytes = 64 << 20
    # Per x block; Pallas double-buffers, so keep 2*budget well under the
    # default scoped VMEM limit (16/32 MiB) and v7x's 64 MiB physical VMEM.
    budget = min(4 << 20, vmem_bytes // 16)
    tb = max(128, (budget // (D * itemsize)) // 128 * 128)
    b_ceil = _round_up(B, 128)
    tb = min(tb, b_ceil)
    # Guarantee >= 2 grid steps so "parallel" shards the batch across v7x's
    # two TensorCores (no-op on v5e/v6e).
    if b_ceil >= 256 and tb > b_ceil // 2:
        tb = max(128, (b_ceil // 2) // 128 * 128)
    # Tiny batches: single exact-fit block (block dims == full array dims).
    if B < tb:
        tb = B
    return tb


def simple_model_forward(x, w1p, b1p, w2p, b2p, *, tile_b=None):
    """x: (B, D) f32; params from prepare_params(). Returns (B, 1) f32."""
    B, D = x.shape
    tb = tile_b if tile_b is not None else _choose_tile_b(B, D, x.dtype.itemsize)
    grid = (pl.cdiv(B, tb),)
    return pl.pallas_call(
        mlp_kernel,
        out_shape=jax.ShapeDtypeStruct((B, OUT), jnp.float32),
        grid=grid,
        in_specs=[
            pl.BlockSpec((tb, D), lambda i: (i, 0)),        # x tile (batch grid)
            pl.BlockSpec(w1p.shape, lambda i: (0, 0)),      # (D, H_PAD), resident
            pl.BlockSpec(b1p.shape, lambda i: (0, 0)),      # (1, H_PAD)
            pl.BlockSpec(w2p.shape, lambda i: (0, 0)),      # (1, H_PAD)
            pl.BlockSpec(b2p.shape, lambda i: (0, 0)),      # (1, 1)
        ],
        out_specs=pl.BlockSpec((tb, OUT), lambda i: (i, 0)),
        compiler_params=pltpu.CompilerParams(
            dimension_semantics=("parallel",)),
    )(x, w1p, b1p, w2p, b2p)


def init_params(key, input_dim):
    """PyTorch-convention params: w1 (10, D), b1 (10,), w2 (1, 10), b2 (1,)."""
    k1, k2, k3, k4 = jax.random.split(key, 4)
    bound1 = 1.0 / jnp.sqrt(jnp.float32(input_dim))
    bound2 = 1.0 / jnp.sqrt(jnp.float32(HIDDEN))
    w1 = jax.random.uniform(k1, (HIDDEN, input_dim), jnp.float32, -bound1, bound1)
    b1 = jax.random.uniform(k2, (HIDDEN,), jnp.float32, -bound1, bound1)
    w2 = jax.random.uniform(k3, (OUT, HIDDEN), jnp.float32, -bound2, bound2)
    b2 = jax.random.uniform(k4, (OUT,), jnp.float32, -bound2, bound2)
    return w1, b1, w2, b2


def prepare_params(w1, b1, w2, b2):
    """Pad HIDDEN 10->16 (zero, numerically inert) and lay out for the kernel."""
    d = w1.shape[1]
    w1p = jnp.zeros((d, HIDDEN_PAD), jnp.float32).at[:, :HIDDEN].set(w1.T)
    b1p = jnp.zeros((1, HIDDEN_PAD), jnp.float32).at[0, :HIDDEN].set(b1)
    w2p = jnp.zeros((1, HIDDEN_PAD), jnp.float32).at[0, :HIDDEN].set(w2[0])
    b2p = b2.reshape(1, 1).astype(jnp.float32)
    return w1p, b1p, w2p, b2p


def reference_forward(x, w1, b1, w2, b2):
    h = jnp.maximum(
        jnp.dot(x, w1.T, precision=jax.lax.Precision.HIGHEST) + b1, 0.0)
    return jax.nn.sigmoid(
        jnp.dot(h, w2.T, precision=jax.lax.Precision.HIGHEST) + b2)


if __name__ == "__main__":
    key = jax.random.PRNGKey(0)
    k_x, k_x2, k_p = jax.random.split(key, 3)

    input_dim = 32
    params = init_params(k_p, input_dim)
    kparams = prepare_params(*params)

    # Tiny batch: single exact-fit block (grid = 1).
    batch = 8
    x = jax.random.normal(k_x, (batch, input_dim), jnp.float32)
    out = jax.block_until_ready(simple_model_forward(x, *kparams))
    assert out.shape == (batch, 1)
    assert jnp.allclose(out, reference_forward(x, *params), atol=5e-3)

    # Ragged multi-tile path: B=300, auto tile (grid of 128-row tiles, last
    # tile partial) and an explicit tile_b=128 override.
    batch2 = 300
    x2 = jax.random.normal(k_x2, (batch2, input_dim), jnp.float32)
    ref2 = reference_forward(x2, *params)

    out2 = jax.block_until_ready(simple_model_forward(x2, *kparams))
    assert out2.shape == (batch2, 1)
    assert jnp.allclose(out2, ref2, atol=5e-3)

    out3 = jax.block_until_ready(simple_model_forward(x2, *kparams, tile_b=128))
    assert out3.shape == (batch2, 1)
    assert jnp.allclose(out3, ref2, atol=5e-3)

    print("KERNEL_OK")
</pallas_src>

<mosaic_0001>
module attributes {stable_mosaic.version = 11 : i64} {
  func.func @mlp_kernel(%arg0: i32, %arg1: memref<8x32xf32, #tpu.memory_space<vmem>>, %arg2: memref<32x16xf32, #tpu.memory_space<vmem>>, %arg3: memref<1x16xf32, #tpu.memory_space<vmem>>, %arg4: memref<1x16xf32, #tpu.memory_space<vmem>>, %arg5: memref<1x1xf32, #tpu.memory_space<vmem>>, %arg6: memref<8x1xf32, #tpu.memory_space<vmem>>) attributes {dimension_semantics = [#tpu.dimension_semantics<parallel>], iteration_bounds = array<i64: 1>, scalar_prefetch = 0 : i64, scratch_operands = 0 : i64, tpu.core_type = #tpu.core_type<tc>, window_params = [{transform_indices = @transform_0, window_bounds = array<i64: 8, 32>}, {pipeline_mode = #tpu.pipeline_mode<synchronous>, transform_indices = @transform_1, window_bounds = array<i64: 32, 16>}, {pipeline_mode = #tpu.pipeline_mode<synchronous>, transform_indices = @transform_2, window_bounds = array<i64: 1, 16>}, {pipeline_mode = #tpu.pipeline_mode<synchronous>, transform_indices = @transform_3, window_bounds = array<i64: 1, 16>}, {pipeline_mode = #tpu.pipeline_mode<synchronous>, transform_indices = @transform_4, window_bounds = array<i64: 1, 1>}, {transform_indices = @transform_5, window_bounds = array<i64: 8, 1>}]} {
    %c0 = arith.constant 0 : index
    %c0_0 = arith.constant 0 : index
    %0 = vector.load %arg1[%c0, %c0_0] : memref<8x32xf32, #tpu.memory_space<vmem>>, vector<8x32xf32>
    %c0_1 = arith.constant 0 : index
    %c0_2 = arith.constant 0 : index
    %1 = vector.load %arg2[%c0_1, %c0_2] : memref<32x16xf32, #tpu.memory_space<vmem>>, vector<32x16xf32>
    %cst = arith.constant dense<0.000000e+00> : vector<8x16xf32>
    %2 = tpu.matmul %0, %1, %cst {dimension_numbers = #tpu.dot_dimension_numbers<[1], [0], [0], [1], [0, 0, 1, 1], [], []>} : vector<8x32xf32>, vector<32x16xf32>, vector<8x16xf32> -> vector<8x16xf32>
    %c0_3 = arith.constant 0 : index
    %c0_4 = arith.constant 0 : index
    %3 = vector.load %arg3[%c0_3, %c0_4] : memref<1x16xf32, #tpu.memory_space<vmem>>, vector<1x16xf32>
    %4 = vector.broadcast %3 : vector<1x16xf32> to vector<8x16xf32>
    %5 = arith.addf %2, %4 : vector<8x16xf32>
    %cst_5 = arith.constant 0.000000e+00 : f32
    %6 = vector.broadcast %cst_5 : f32 to vector<8x16xf32>
    %7 = arith.maximumf %5, %6 : vector<8x16xf32>
    %c0_6 = arith.constant 0 : index
    %c0_7 = arith.constant 0 : index
    %8 = vector.load %arg4[%c0_6, %c0_7] : memref<1x16xf32, #tpu.memory_space<vmem>>, vector<1x16xf32>
    %9 = vector.broadcast %8 : vector<1x16xf32> to vector<8x16xf32>
    %10 = arith.mulf %7, %9 : vector<8x16xf32>
    %cst_8 = arith.constant dense<0.000000e+00> : vector<8xf32>
    %11 = vector.multi_reduction <add>, %10, %cst_8 [1] : vector<8x16xf32> to vector<8xf32>
    %12 = vector.shape_cast %11 : vector<8xf32> to vector<8x1xf32>
    %c0_9 = arith.constant 0 : index
    %c0_10 = arith.constant 0 : index
    %13 = vector.load %arg5[%c0_9, %c0_10] : memref<1x1xf32, #tpu.memory_space<vmem>>, vector<1x1xf32>
    %14 = vector.broadcast %13 : vector<1x1xf32> to vector<8x1xf32>
    %15 = arith.addf %12, %14 : vector<8x1xf32>
    %16 = arith.negf %15 : vector<8x1xf32>
    %17 = math.exp %16 : vector<8x1xf32>
    %cst_11 = arith.constant 1.000000e+00 : f32
    %18 = vector.broadcast %cst_11 : f32 to vector<8x1xf32>
    %19 = arith.addf %18, %17 : vector<8x1xf32>
    %20 = arith.divf %18, %19 : vector<8x1xf32>
    %c0_12 = arith.constant 0 : index
    %c0_13 = arith.constant 0 : index
    %21 = vector.load %arg6[%c0_12, %c0_13] : memref<8x1xf32, #tpu.memory_space<vmem>>, vector<8x1xf32>
    tpu.vector_store %arg6[%c0_12, %c0_13], %20 {strides = array<i32>} : memref<8x1xf32, #tpu.memory_space<vmem>>, vector<8x1xf32>,
    return
  }
  func.func @transform_0(%arg0: i32) -> (i32, i32) {
    %c0_i32 = arith.constant 0 : i32
    %c0_i32_0 = arith.constant 0 : i32
    return %arg0, %c0_i32 : i32, i32
  }
  func.func @transform_1(%arg0: i32) -> (i32, i32) {
    %c0_i32 = arith.constant 0 : i32
    %c0_i32_0 = arith.constant 0 : i32
    %c0_i32_1 = arith.constant 0 : i32
    return %c0_i32, %c0_i32_0 : i32, i32
  }
  func.func @transform_2(%arg0: i32) -> (i32, i32) {
    %c0_i32 = arith.constant 0 : i32
    %c0_i32_0 = arith.constant 0 : i32
    %c0_i32_1 = arith.constant 0 : i32
    return %c0_i32, %c0_i32_0 : i32, i32
  }
  func.func @transform_3(%arg0: i32) -> (i32, i32) {
    %c0_i32 = arith.constant 0 : i32
    %c0_i32_0 = arith.constant 0 : i32
    %c0_i32_1 = arith.constant 0 : i32
    return %c0_i32, %c0_i32_0 : i32, i32
  }
  func.func @transform_4(%arg0: i32) -> (i32, i32) {
    %c0_i32 = arith.constant 0 : i32
    %c0_i32_0 = arith.constant 0 : i32
    %c0_i32_1 = arith.constant 0 : i32
    return %c0_i32, %c0_i32_0 : i32, i32
  }
  func.func @transform_5(%arg0: i32) -> (i32, i32) {
    %c0_i32 = arith.constant 0 : i32
    %c0_i32_0 = arith.constant 0 : i32
    return %arg0, %c0_i32 : i32, i32
  }
}

</mosaic_0001>

<bundles_post_ra>
// kernel: tpu_custom_call.1
= control target key start
LH: loop header
LB: loop body
LE: loop exit
PB: predicated region body
PF: predicated region fallthrough
CT: control target
= control target key end

     0   :  { %vm31_vm0 = vcmask 261120   ;;  %vm61_vm1 = vcmask 130048   ;;  %vm89_vm5 = vcmask 7168   ;;  %s161_s1 = inlined_call_operand.vmem [shape: f32[32,16], index: 1, kind: input, shape index: {}]   ;;  %s162_s2 = inlined_call_operand.vmem [shape: f32[1,16], index: 2, kind: input, shape index: {}]   ;;  %s163_s0 = inlined_call_operand.vmem [shape: f32[8,32], index: 0, kind: input, shape index: {}]   ;;  %s164_s3 = inlined_call_operand.vmem [shape: f32[1,16], index: 3, kind: input, shape index: {}]   ;;  %s165_s4 = inlined_call_operand.<no memory space> [shape: f32[1,1], index: 4, kind: input, shape index: {}]   ;;  %s166_s5 = inlined_call_operand.vmem [shape: f32[8,1], index: 5, kind: output, shape index: {}]  }
   0x1   :  { %v26_v0 = vld [vmem:[%s161_s1 + $0x18] sm:$0xff]  ;;  %v25_v1 = vld [vmem:[%s161_s1 + $0x10] sm:$0xff]  ;;  %v24_v2 = vld [vmem:[%s161_s1 + $0x8] sm:$0xff]  ;;  %v10_v5 = vstv %s165_s4 }
   0x2   :  { %47 = vmatpush.msra.mxu0 %v26_v0  ;;  %v23_v3 = vld [vmem:[%s161_s1] sm:$0xff]  ;;  %11 = vst [vmem:[#allocation2] sm:$0x1] %v10_v5 }
   0x3   :  { %v22_v4 = vld [vmem:[%s163_s0] sm:$0xff] }
   0x4   :  { %48 = vmatpush.msra.mxu0 %v25_v1  ;;  %v97_v6 = vld [vmem:[%s162_s2] ss:$0 sm:$0xff] }
   0x5   :  { %v98_v9 = vld [vmem:[%s164_s3] ss:$0 sm:$0xff] }
   0x6   :  { %49 = vmatpush.msra.mxu0 %v24_v2 }
   0x8   :  { %50 = vmatpush.msra.mxu0 %v23_v3 }
   0x9   :  { %95 = vmatmul.msk.f32.vlgmr.msra.gmra.mxu0 %vm31_vm0, %v22_v4  ;;  %v99_v13 = vld [vmem:[#allocation2] ss:$0 sm:$0xff] }
  0x86   :  { %v52_v7 = vpop.f32.mrf.mxu0 }
  0x87   :  { %v53_v8 = vadd.f32 %v97_v6, %v52_v7 }
  0x89   :  { %v55_v10 = vmax.f32 %v53_v8, 0.0 }
  0x8b   :  { %v60_v11 = vmul.f32 %v98_v9, %v55_v10 }
  0x8d   :  { %v62_v12 = vsel %vm61_vm1, %v60_v11, 0.0 }
  0x8e   :  { %63 = vadd.xlane.f32.xlu0 %v62_v12 }
 0x101   :  { %v64_v14 = vpop.xlane.xlu0 %63 }
 0x102   :  { %v69_v15 = vadd.f32 %v99_v13, %v64_v14 }
 0x104   :  { %v96_v16 = vmul.f32 -1.442695, %v69_v15 }
 0x106   :  { %100 = vpow2.f32 %v96_v16 }
 0x10c   :  { %v101_v17 = vpop.eup %100 }
 0x10d   :  { %v73_v18 = vadd.f32 1.0, %v101_v17 }
 0x10f   :  { %102 = vrcp.f32 %v73_v18  ;;  %v85_v22 = vand.u32 2147483648, %v73_v18  ;;  %v83_v24 = vand.u32 2147483647, %v73_v18  ;;  %vm79_vm3 = vweird.f32 %v73_v18 }
 0x111   :  { %v86_v26 = vor.u32 1.1754944e-38, %v85_v22  ;;  %vm84_vm6 = vcmp.eq.f32.partialorder %v83_v24, 8.507059e+37 }
 0x115   :  { %v103_v19 = vpop.eup %102 }
 0x116   :  { %v75_v20 = vmul.f32 %v103_v19, %v73_v18  ;;  %vm80_vm2 = vweird.f32 %v103_v19 }
 0x117   :  { %vm81_vm4 = vmor %vm79_vm3, %vm80_vm2 }
 0x118   :  { %v76_v21 = vsub.f32 1.0, %v75_v20 }
 0x11a   :  { %v77_v23 = vmul.f32 %v103_v19, %v76_v21 }
 0x11c   :  { %v78_v25 = vadd.f32 %v103_v19, %v77_v23 }
 0x11e   :  { %v82_v27 = vsel %vm81_vm4, %v103_v19, %v78_v25 }
 0x11f   :  { %v87_v28 = vsel %vm84_vm6, %v86_v26, %v82_v27 }
 0x120   :  { %90 = vst.msk [vmem:[%s166_s5] sm:$0xff] %vm89_vm5, %v87_v28 }

</bundles_post_ra>
